<compile_context>
chip_gen: v7x
topology: tpu7x:2x2x1
jax: 0.10.0
libtpu: 0.0.40
codegen_flags: <defaults>
</compile_context>

<pallas_src>
import functools
import math

import jax
import jax.numpy as jnp
from jax import lax
from jax.experimental import pallas as pl
from jax.experimental.pallas import tpu as pltpu


# ---------------------------------------------------------------------------
# Helpers
# ---------------------------------------------------------------------------
def _pick_tile(extent, preferred):
    """Largest multiple-of-8 tile <= preferred that divides `extent`."""
    if extent <= preferred:
        return extent
    tile = (min(preferred, extent) // 8) * 8
    while tile >= 8:
        if extent % tile == 0:
            return tile
        tile -= 8
    # TODO(synk): add a padding path for awkward sequence lengths instead of
    # failing (previous version silently used tile == S and blew the VMEM
    # budget).
    raise ValueError(
        f"No multiple-of-8 tile <= {preferred} divides sequence length "
        f"{extent}; pad the sequence to a multiple of 8.")


def _default_vmem_limit_bytes():
    """~75% of physical VMEM: ~96 MiB on v5e/v6e (128 MiB), ~48 MiB on v7x."""
    cap = None
    try:
        cap = getattr(pltpu.get_tpu_info(), "vmem_capacity_bytes", None)
    except Exception:
        cap = None
    if not cap:
        cap = 64 * 1024 * 1024          # conservative (v7x-sized) fallback
    return int(cap * 3 // 4)


def _resident_weight_spec(shape, index_map):
    """Constant-index weight BlockSpec, single-buffered when supported.

    The block is only ever fetched once, so double-buffering it would just
    double its VMEM residency (review item for v7x's 64 MiB budget).
    """
    if hasattr(pl, "Buffered"):
        try:
            return pl.BlockSpec(shape, index_map, pipeline_mode=pl.Buffered(1))
        except TypeError:
            pass
    return pl.BlockSpec(shape, index_map)


# ---------------------------------------------------------------------------
# Pass 1: fused Q/K/V projection into head-major (B, nh, S, hd) layout.
# Grid: (B, S // tp, num_heads); the x tile stays VMEM-resident across heads.
# ---------------------------------------------------------------------------
def _qkv_projection_kernel(x_ref, wq_ref, wk_ref, wv_ref, q_ref, k_ref, v_ref):
    h = pl.program_id(2)
    x = x_ref[...]                                        # (TP, F), native dtype
    # Per-head weight slabs are read from VMEM-resident (nh, F, hd) tensors
    # (constant index_map, single-buffered), indexed along the leading axis.
    # Wq already carries the 1/sqrt(hd) softmax scale (folded in the wrapper).
    q_ref[...] = jnp.dot(x, wq_ref[h],
                         preferred_element_type=jnp.float32).astype(q_ref.dtype)
    k_ref[...] = jnp.dot(x, wk_ref[h],
                         preferred_element_type=jnp.float32).astype(k_ref.dtype)
    v_ref[...] = jnp.dot(x, wv_ref[h],
                         preferred_element_type=jnp.float32).astype(v_ref.dtype)


# ---------------------------------------------------------------------------
# Pass 2: per-head flash attention with the output projection fused in.
# Grid: (B, S // tq, num_heads, S // tk); the output tile (TQ, F) is resident
# (and accumulated into) across both the head and key/value axes.
# ---------------------------------------------------------------------------
def _flash_attention_kernel(q_ref, k_ref, v_ref, wo_ref, o_ref,
                            m_scr, l_scr, acc_scr, out_scr, *, exp_dtype):
    h = pl.program_id(2)
    ki = pl.program_id(3)
    nh = pl.num_programs(2)
    nk = pl.num_programs(3)

    @pl.when(jnp.logical_and(h == 0, ki == 0))
    def _zero_output_acc():
        out_scr[...] = jnp.zeros_like(out_scr)

    @pl.when(ki == 0)
    def _reset_head_state():
        m_scr[...] = jnp.full(m_scr.shape, -jnp.inf, dtype=m_scr.dtype)
        l_scr[...] = jnp.zeros_like(l_scr)
        acc_scr[...] = jnp.zeros_like(acc_scr)

    q = q_ref[...]                                        # (TQ, hd), pre-scaled
    k = k_ref[...]                                        # (TK, hd)
    v = v_ref[...]                                        # (TK, hd)

    # Scores for this head/tile: contract the head dim on the MXU, f32 acc.
    s = lax.dot_general(q, k, (((1,), (1,)), ((), ())),
                        preferred_element_type=jnp.float32)        # (TQ, TK)

    # Online-softmax update; statistics stay in f32.  exp_dtype=bf16 on
    # v6e/v7x rides the bf16 EUP (keep f32 on v5e).
    m_prev = m_scr[...]
    m_new = jnp.maximum(m_prev, jnp.max(s, axis=-1, keepdims=True))
    alpha = jnp.exp(m_prev - m_new)
    p = jnp.exp((s - m_new).astype(exp_dtype))
    l_scr[...] = alpha * l_scr[...] + jnp.sum(
        p, axis=-1, keepdims=True, dtype=jnp.float32)
    acc_scr[...] = alpha * acc_scr[...] + jnp.dot(
        p.astype(v.dtype), v, preferred_element_type=jnp.float32)
    m_scr[...] = m_new

    @pl.when(ki == nk - 1)
    def _finish_head():
        # Exact reciprocal for production parity with the PyTorch module.
        inv_l = pl.reciprocal(l_scr[...], approx=False)             # (TQ, 1)
        head_out = (acc_scr[...] * inv_l).astype(wo_ref.dtype)      # (TQ, hd)
        # Fused output projection: accumulate this head's contribution.
        out_scr[...] += jnp.dot(head_out, wo_ref[h],
                                preferred_element_type=jnp.float32)  # (TQ, F)

    @pl.when(jnp.logical_and(ki == nk - 1, h == nh - 1))
    def _store():
        # TODO(synk): keep F a multiple of 128 at production sizes so this
        # store is lane-dense; F=32 in the demo forces masked partial stores.
        o_ref[...] = out_scr[...].astype(o_ref.dtype)


# ---------------------------------------------------------------------------
# Wrapper
# ---------------------------------------------------------------------------
def self_attention(x, wq, wk, wv, wo, num_heads, *, tq=256, tk=256,
                   proj_tile=512, exp_dtype=jnp.float32, mxu_dtype=None):
    """x: (B, S, F); wq/wk/wv: (F, H); wo: (H, F).  Returns (B, S, F).

    tq/tk default to 256 (fits a ~48 MiB v7x budget); v5e/v6e can raise tq
    toward 512.  Pass mxu_dtype=jnp.bfloat16 (and exp_dtype=jnp.bfloat16 on
    v6e/v7x) for the bf16 MXU/EUP paths; accumulation stays f32 either way.
    """
    B, S, F = x.shape
    H = wq.shape[1]
    assert H % num_heads == 0, "hidden_dim must be divisible by num_heads"
    hd = H // num_heads
    scale = 1.0 / math.sqrt(hd)

    if mxu_dtype is not None:
        x = x.astype(mxu_dtype)
        wq, wk, wv, wo = (w.astype(mxu_dtype) for w in (wq, wk, wv, wo))

    # Fold the softmax scale into Wq (zero in-kernel cost) and build head-major
    # weight layouts once at trace time: (nh, F, hd) for Q/K/V, (nh, hd, F)
    # for the output projection.
    wq_h = (wq * jnp.asarray(scale, wq.dtype)).reshape(
        F, num_heads, hd).transpose(1, 0, 2)
    wk_h = wk.reshape(F, num_heads, hd).transpose(1, 0, 2)
    wv_h = wv.reshape(F, num_heads, hd).transpose(1, 0, 2)
    wo_h = wo.reshape(num_heads, hd, F)

    tq = _pick_tile(S, tq)
    tk = _pick_tile(S, tk)
    tp = _pick_tile(S, proj_tile)
    vmem_limit = _default_vmem_limit_bytes()

    # ---- Pass 1: project x -> Q, K, V (head-major, computed exactly once) ---
    qkv_shape = jax.ShapeDtypeStruct((B, num_heads, S, hd), x.dtype)
    q, k, v = pl.pallas_call(
        _qkv_projection_kernel,
        out_shape=[qkv_shape, qkv_shape, qkv_shape],
        grid_spec=pltpu.PrefetchScalarGridSpec(
            num_scalar_prefetch=0,
            grid=(B, S // tp, num_heads),
            in_specs=[
                # x tile: resident across the inner head axis.
                pl.BlockSpec((None, tp, F), lambda b, si, h: (b, si, 0)),
                _resident_weight_spec((num_heads, F, hd),
                                      lambda b, si, h: (0, 0, 0)),
                _resident_weight_spec((num_heads, F, hd),
                                      lambda b, si, h: (0, 0, 0)),
                _resident_weight_spec((num_heads, F, hd),
                                      lambda b, si, h: (0, 0, 0)),
            ],
            out_specs=[
                pl.BlockSpec((None, None, tp, hd), lambda b, si, h: (b, h, si, 0)),
                pl.BlockSpec((None, None, tp, hd), lambda b, si, h: (b, h, si, 0)),
                pl.BlockSpec((None, None, tp, hd), lambda b, si, h: (b, h, si, 0)),
            ],
        ),
        compiler_params=pltpu.CompilerParams(
            dimension_semantics=("parallel", "parallel", "parallel"),
            vmem_limit_bytes=vmem_limit,
        ),
    )(x, wq_h, wk_h, wv_h)

    # ---- Pass 2: flash attention + fused output projection -----------------
    kernel = functools.partial(_flash_attention_kernel, exp_dtype=exp_dtype)
    out = pl.pallas_call(
        kernel,
        out_shape=jax.ShapeDtypeStruct((B, S, F), x.dtype),
        grid_spec=pltpu.PrefetchScalarGridSpec(
            num_scalar_prefetch=0,
            grid=(B, S // tq, num_heads, S // tk),
            in_specs=[
                # Q tile: resident across the K/V reduction axis.
                pl.BlockSpec((None, None, tq, hd),
                             lambda b, qi, h, ki: (b, h, qi, 0)),
                pl.BlockSpec((None, None, tk, hd),
                             lambda b, qi, h, ki: (b, h, ki, 0)),
                pl.BlockSpec((None, None, tk, hd),
                             lambda b, qi, h, ki: (b, h, ki, 0)),
                _resident_weight_spec((num_heads, hd, F),
                                      lambda b, qi, h, ki: (0, 0, 0)),
            ],
            out_specs=pl.BlockSpec((None, tq, F), lambda b, qi, h, ki: (b, qi, 0)),
            scratch_shapes=[
                pltpu.VMEM((tq, 1), jnp.float32),    # running max
                pltpu.VMEM((tq, 1), jnp.float32),    # running sum
                pltpu.VMEM((tq, hd), jnp.float32),   # per-head PV accumulator
                pltpu.VMEM((tq, F), jnp.float32),    # output-projection accum
            ],
        ),
        compiler_params=pltpu.CompilerParams(
            # (B, qi) are independent -> megacore; (h, ki) carry accumulators.
            dimension_semantics=("parallel", "parallel", "arbitrary", "arbitrary"),
            vmem_limit_bytes=vmem_limit,
        ),
    )(q, k, v, wo_h)
    return out


# ---------------------------------------------------------------------------
# Pure-JAX reference mirroring the PyTorch forward.
# ---------------------------------------------------------------------------
def reference_self_attention(x, wq, wk, wv, wo, num_heads):
    B, S, _ = x.shape
    H = wq.shape[1]
    hd = H // num_heads
    q = (x @ wq).reshape(B, S, num_heads, hd).transpose(0, 2, 1, 3)
    k = (x @ wk).reshape(B, S, num_heads, hd).transpose(0, 2, 1, 3)
    v = (x @ wv).reshape(B, S, num_heads, hd).transpose(0, 2, 1, 3)
    s = jnp.einsum('BHQD,BHKD->BHQK', q, k) / math.sqrt(hd)
    p = jax.nn.softmax(s, axis=-1)
    o = jnp.einsum('BHQK,BHKD->BHQD', p, v)
    o = o.transpose(0, 2, 1, 3).reshape(B, S, H)
    return o @ wo


if __name__ == "__main__":
    # Small shapes consistent with the module: batch=2, seq=8, in_features=32,
    # hidden_dim=32, num_heads=4 (head_dim=8).
    B, S, F, H, NH = 2, 8, 32, 32, 4

    key = jax.random.PRNGKey(0)
    kx, kq, kk, kvk, ko = jax.random.split(key, 5)

    x = jax.random.normal(kx, (B, S, F), dtype=jnp.float32)
    # nn.Linear(in, out, bias=False) weight is (out, in); we store the
    # transposed (in, out) form directly so the kernels compute x @ W.
    wq = jax.random.normal(kq, (F, H), dtype=jnp.float32) * (1.0 / math.sqrt(F))
    wk = jax.random.normal(kk, (F, H), dtype=jnp.float32) * (1.0 / math.sqrt(F))
    wv = jax.random.normal(kvk, (F, H), dtype=jnp.float32) * (1.0 / math.sqrt(F))
    wo = jax.random.normal(ko, (H, F), dtype=jnp.float32) * (1.0 / math.sqrt(H))

    out = jax.block_until_ready(self_attention(x, wq, wk, wv, wo, NH))
    ref = reference_self_attention(x, wq, wk, wv, wo, NH)

    assert out.shape == (B, S, F)
    # Exact reciprocal + f32 accumulation: only the online- vs one-shot
    # softmax accumulation order differs from the reference.
    assert jnp.allclose(out, ref, atol=2e-3, rtol=2e-3), "mismatch vs reference"

    print("KERNEL_OK")
</pallas_src>

<mosaic_0001>
module attributes {stable_mosaic.version = 11 : i64} {
  func.func @_qkv_projection_kernel(%arg0: i32, %arg1: i32, %arg2: i32, %arg3: memref<1x8x32xf32, #tpu.memory_space<vmem>>, %arg4: memref<4x32x8xf32, #tpu.memory_space<vmem>>, %arg5: memref<4x32x8xf32, #tpu.memory_space<vmem>>, %arg6: memref<4x32x8xf32, #tpu.memory_space<vmem>>, %arg7: memref<1x1x8x8xf32, #tpu.memory_space<vmem>>, %arg8: memref<1x1x8x8xf32, #tpu.memory_space<vmem>>, %arg9: memref<1x1x8x8xf32, #tpu.memory_space<vmem>>) attributes {dimension_semantics = [#tpu.dimension_semantics<parallel>, #tpu.dimension_semantics<parallel>, #tpu.dimension_semantics<parallel>], iteration_bounds = array<i64: 2, 1, 4>, scalar_prefetch = 0 : i64, scratch_operands = 0 : i64, tpu.core_type = #tpu.core_type<tc>, window_params = [{transform_indices = @transform_0, window_bounds = array<i64: 1, 8, 32>}, {pipeline_mode = #tpu.pipeline_mode<synchronous>, transform_indices = @transform_1, window_bounds = array<i64: 4, 32, 8>}, {pipeline_mode = #tpu.pipeline_mode<synchronous>, transform_indices = @transform_2, window_bounds = array<i64: 4, 32, 8>}, {pipeline_mode = #tpu.pipeline_mode<synchronous>, transform_indices = @transform_3, window_bounds = array<i64: 4, 32, 8>}, {transform_indices = @transform_4, window_bounds = array<i64: 1, 1, 8, 8>}, {transform_indices = @transform_5, window_bounds = array<i64: 1, 1, 8, 8>}, {transform_indices = @transform_6, window_bounds = array<i64: 1, 1, 8, 8>}]} {
    %c0 = arith.constant 0 : index
    %c0_0 = arith.constant 0 : index
    %c0_1 = arith.constant 0 : index
    %0 = vector.load %arg3[%c0, %c0_0, %c0_1] : memref<1x8x32xf32, #tpu.memory_space<vmem>>, vector<1x8x32xf32>
    %1 = vector.shape_cast %0 : vector<1x8x32xf32> to vector<8x32xf32>
    %2 = arith.index_cast %arg2 : i32 to index
    %c0_2 = arith.constant 0 : index
    %c0_3 = arith.constant 0 : index
    %3 = vector.load %arg4[%2, %c0_2, %c0_3] : memref<4x32x8xf32, #tpu.memory_space<vmem>>, vector<1x32x8xf32>
    %4 = vector.shape_cast %3 : vector<1x32x8xf32> to vector<32x8xf32>
    %cst = arith.constant dense<0.000000e+00> : vector<8x8xf32>
    %5 = tpu.matmul %1, %4, %cst {dimension_numbers = #tpu.dot_dimension_numbers<[1], [0], [0], [1], [0, 0, 1, 1], [], []>} : vector<8x32xf32>, vector<32x8xf32>, vector<8x8xf32> -> vector<8x8xf32>
    %c0_4 = arith.constant 0 : index
    %c0_5 = arith.constant 0 : index
    %c0_6 = arith.constant 0 : index
    %c0_7 = arith.constant 0 : index
    %6 = vector.load %arg7[%c0_4, %c0_5, %c0_6, %c0_7] : memref<1x1x8x8xf32, #tpu.memory_space<vmem>>, vector<1x1x8x8xf32>
    %7 = vector.shape_cast %6 : vector<1x1x8x8xf32> to vector<8x8xf32>
    %8 = vector.shape_cast %5 : vector<8x8xf32> to vector<1x1x8x8xf32>
    tpu.vector_store %arg7[%c0_4, %c0_5, %c0_6, %c0_7], %8 {strides = array<i32>} : memref<1x1x8x8xf32, #tpu.memory_space<vmem>>, vector<1x1x8x8xf32>,
    %9 = arith.index_cast %arg2 : i32 to index
    %c0_8 = arith.constant 0 : index
    %c0_9 = arith.constant 0 : index
    %10 = vector.load %arg5[%9, %c0_8, %c0_9] : memref<4x32x8xf32, #tpu.memory_space<vmem>>, vector<1x32x8xf32>
    %11 = vector.shape_cast %10 : vector<1x32x8xf32> to vector<32x8xf32>
    %cst_10 = arith.constant dense<0.000000e+00> : vector<8x8xf32>
    %12 = tpu.matmul %1, %11, %cst_10 {dimension_numbers = #tpu.dot_dimension_numbers<[1], [0], [0], [1], [0, 0, 1, 1], [], []>} : vector<8x32xf32>, vector<32x8xf32>, vector<8x8xf32> -> vector<8x8xf32>
    %c0_11 = arith.constant 0 : index
    %c0_12 = arith.constant 0 : index
    %c0_13 = arith.constant 0 : index
    %c0_14 = arith.constant 0 : index
    %13 = vector.load %arg8[%c0_11, %c0_12, %c0_13, %c0_14] : memref<1x1x8x8xf32, #tpu.memory_space<vmem>>, vector<1x1x8x8xf32>
    %14 = vector.shape_cast %13 : vector<1x1x8x8xf32> to vector<8x8xf32>
    %15 = vector.shape_cast %12 : vector<8x8xf32> to vector<1x1x8x8xf32>
    tpu.vector_store %arg8[%c0_11, %c0_12, %c0_13, %c0_14], %15 {strides = array<i32>} : memref<1x1x8x8xf32, #tpu.memory_space<vmem>>, vector<1x1x8x8xf32>,
    %16 = arith.index_cast %arg2 : i32 to index
    %c0_15 = arith.constant 0 : index
    %c0_16 = arith.constant 0 : index
    %17 = vector.load %arg6[%16, %c0_15, %c0_16] : memref<4x32x8xf32, #tpu.memory_space<vmem>>, vector<1x32x8xf32>
    %18 = vector.shape_cast %17 : vector<1x32x8xf32> to vector<32x8xf32>
    %cst_17 = arith.constant dense<0.000000e+00> : vector<8x8xf32>
    %19 = tpu.matmul %1, %18, %cst_17 {dimension_numbers = #tpu.dot_dimension_numbers<[1], [0], [0], [1], [0, 0, 1, 1], [], []>} : vector<8x32xf32>, vector<32x8xf32>, vector<8x8xf32> -> vector<8x8xf32>
    %c0_18 = arith.constant 0 : index
    %c0_19 = arith.constant 0 : index
    %c0_20 = arith.constant 0 : index
    %c0_21 = arith.constant 0 : index
    %20 = vector.load %arg9[%c0_18, %c0_19, %c0_20, %c0_21] : memref<1x1x8x8xf32, #tpu.memory_space<vmem>>, vector<1x1x8x8xf32>
    %21 = vector.shape_cast %20 : vector<1x1x8x8xf32> to vector<8x8xf32>
    %22 = vector.shape_cast %19 : vector<8x8xf32> to vector<1x1x8x8xf32>
    tpu.vector_store %arg9[%c0_18, %c0_19, %c0_20, %c0_21], %22 {strides = array<i32>} : memref<1x1x8x8xf32, #tpu.memory_space<vmem>>, vector<1x1x8x8xf32>,
    return
  }
  func.func @transform_0(%arg0: i32, %arg1: i32, %arg2: i32) -> (i32, i32, i32) {
    %c0_i32 = arith.constant 0 : i32
    %c0_i32_0 = arith.constant 0 : i32
    return %arg0, %arg1, %c0_i32 : i32, i32, i32
  }
  func.func @transform_1(%arg0: i32, %arg1: i32, %arg2: i32) -> (i32, i32, i32) {
    %c0_i32 = arith.constant 0 : i32
    %c0_i32_0 = arith.constant 0 : i32
    %c0_i32_1 = arith.constant 0 : i32
    %c0_i32_2 = arith.constant 0 : i32
    return %c0_i32, %c0_i32_0, %c0_i32_1 : i32, i32, i32
  }
  func.func @transform_2(%arg0: i32, %arg1: i32, %arg2: i32) -> (i32, i32, i32) {
    %c0_i32 = arith.constant 0 : i32
    %c0_i32_0 = arith.constant 0 : i32
    %c0_i32_1 = arith.constant 0 : i32
    %c0_i32_2 = arith.constant 0 : i32
    return %c0_i32, %c0_i32_0, %c0_i32_1 : i32, i32, i32
  }
  func.func @transform_3(%arg0: i32, %arg1: i32, %arg2: i32) -> (i32, i32, i32) {
    %c0_i32 = arith.constant 0 : i32
    %c0_i32_0 = arith.constant 0 : i32
    %c0_i32_1 = arith.constant 0 : i32
    %c0_i32_2 = arith.constant 0 : i32
    return %c0_i32, %c0_i32_0, %c0_i32_1 : i32, i32, i32
  }
  func.func @transform_4(%arg0: i32, %arg1: i32, %arg2: i32) -> (i32, i32, i32, i32) {
    %c0_i32 = arith.constant 0 : i32
    %c0_i32_0 = arith.constant 0 : i32
    return %arg0, %arg2, %arg1, %c0_i32 : i32, i32, i32, i32
  }
  func.func @transform_5(%arg0: i32, %arg1: i32, %arg2: i32) -> (i32, i32, i32, i32) {
    %c0_i32 = arith.constant 0 : i32
    %c0_i32_0 = arith.constant 0 : i32
    return %arg0, %arg2, %arg1, %c0_i32 : i32, i32, i32, i32
  }
  func.func @transform_6(%arg0: i32, %arg1: i32, %arg2: i32) -> (i32, i32, i32, i32) {
    %c0_i32 = arith.constant 0 : i32
    %c0_i32_0 = arith.constant 0 : i32
    return %arg0, %arg2, %arg1, %c0_i32 : i32, i32, i32, i32
  }
}

</mosaic_0001>

<bundles_post_ra>
// kernel: tpu_custom_call.1
= control target key start
LH: loop header
LB: loop body
LE: loop exit
PB: predicated region body
PF: predicated region fallthrough
CT: control target
= control target key end

     0   :  { %s1364_s0 = inlined_call_operand.vmem [shape: f32[2,8,32], index: 0, kind: input, shape index: {}]   ;;  %s1365_s1 = inlined_call_operand.vmem [shape: f32[4,32,8], index: 1, kind: input, shape index: {}]   ;;  %s1366_s2 = inlined_call_operand.vmem [shape: f32[4,32,8], index: 2, kind: input, shape index: {}]   ;;  %s1367_s3 = inlined_call_operand.vmem [shape: f32[4,32,8], index: 3, kind: input, shape index: {}]   ;;  %s1368_s4 = inlined_call_operand.hbm [shape: f32[2,4,8,8], index: 4, kind: output, shape index: {0}]   ;;  %s1369_s5 = inlined_call_operand.hbm [shape: f32[2,4,8,8], index: 5, kind: output, shape index: {1}]   ;;  %s1370_s6 = inlined_call_operand.hbm [shape: f32[2,4,8,8], index: 6, kind: output, shape index: {2}]  }
   0x1   :  { %1372 = sst [smem:[#allocation9_spill]] %s1364_s0 }
   0x2   :  { %1373 = sst [smem:[#allocation10_spill]] %s1365_s1 }
   0x3   :  { %1374 = sst [smem:[#allocation11_spill]] %s1366_s2 }
   0x4   :  { %12 = vsyncpa [#allocation3], 0 }
   0x5   :  { %14 = vsyncpa [#allocation3 + $0x1], 0 }
   0x6   :  { %15 = vsyncpa [#allocation5], 0 }
   0x7   :  { %17 = vsyncpa [#allocation5 + $0x1], 0  ;;  %s1124_s21 = smov 0   ;;  %s1126_s22 = smov 0  }
   0x8   :  { %s1128_s23 = smov 0   ;;  %s1130_s24 = smov 0  }
   0x9   :  { %s1132_s25 = smov 0   ;;  %s1134_s26 = smov 0  }
   0xa   :  { %s1136_s27 = smov 0   ;;  %s1138_s28 = smov 0  }
   0xb LB: > { %s753_s29 = sadd.s32 4294967295, %s1081_s28   ;;  %s1371_s30 = sadd.s32 4294967294, %s1081_s28   ;;  %s1081_s28 = sphi %s1138_s28, %s23_s28   ;;  %s1077_s27 = sphi %s1136_s27, %s1387_s27   ;;  %s1073_s26 = sphi %s1134_s26, %s1386_s26   ;;  %s1069_s25 = sphi %s1132_s25, %s1385_s25   ;;  %s1065_s24 = sphi %s1130_s24, %s1384_s24   ;;  %s1061_s23 = sphi %s1128_s23, %s1383_s23   ;;  %s1057_s22 = sphi %s1126_s22, %s1382_s22   ;;  %s1053_s21 = sphi %s1124_s21, %s1381_s21  }
   0xc   : > { %s35_s7 = sadd.s32 1, %s1073_s26  ;;  %s42_s8 = sadd.s32 1, %s1077_s27 }
   0xd   : > { %p36_p0 = scmp.ge.s32.totalorder %s35_s7, 4  ;;  %p154_p1 = scmp.ne.s32.totalorder %s1061_s23, %s1057_s22 }
   0xe   : > { %p155_p2 = scmp.eq.s32.totalorder %s753_s29, 7  ;;  %p160_p5 = scmp.ne.s32.totalorder %s1057_s22, %s1053_s21 }
   0xf   : > { %s1389_s7 = smov (%p36_p0, %s35_s7), 0  ;;  %s1391_s8 = smov (!%p36_p0, %s42_s8), %s1077_s27 }
  0x10   : > { %s138_s9 = ssub.s32 %s1073_s26, %s1389_s7  ;;  %p1177_p3 = por %p155_p2, %p154_p1 }
  0x11   : > { %p44_p4 = scmp.ge.s32.totalorder %s1391_s8, 2  ;;  %p161_p6 = scmp.eq.s32.totalorder %s1371_s30, 7 }
  0x12   : > { %p757_p7 = scmp.ge.s32.totalorder %s1081_s28, 1  ;;  %p258_p9 = scmp.lt.s32.totalorder %s1081_s28, 9 }
  0x13   : > { %s1393_s8 = smov (%p44_p4, %s1391_s8), 0  ;;  %p1188_p8 = por %p161_p6, %p160_p5 }
  0x14   : > { %s137_s12 = ssub.s32 %s1077_s27, %s1393_s8  ;;  %s144_s13 = sadd.s32 1, %s1061_s23 }
  0x15   : > { %s139_s14 = sor.u32 %s138_s9, %s137_s12  ;;  %p259_p10 = pnand %p757_p7, %p258_p9 }
  0x16   : > { %p142_p11 = scmp.eq.s32.totalorder %s139_s14, 0  ;;  %s762_s16 = sshll.u32 (!%p259_p10), %s1065_s24, 5  ;;  %v1083_v0 = vmov (!%p259_p10), 0.0|0.0   ;;  %vm1084_vm0 = vmmov (!%p259_p10), 0   ;;  %v1085_v4 = vmov (!%p259_p10), 0.0   ;;  %vm314_vm1 = vcmask (!%p259_p10), 261120  }
  0x17   : > { %262 = sbr.rel (%p259_p10) target bundleno = 316 (0x13c), region = 36  ;;  %p300_p12 = scmp.lt.s32.totalorder (!%p259_p10), %s1069_s25, 1  ;;  %825 = vmatprep.subr.bf16.mxu0 (!%p259_p10), %v1083_v0  ;;  %831 = vmatprep.subr.bf16.mxu1 (!%p259_p10), %v1083_v0  ;;  %vm388_vm2 = vcmask (!%p259_p10), 64512  }
  0x18   : > { %s1197_s15 = scalar_select %p142_p11, %s1061_s23, %s144_s13  }
  0x19   : > { %s1377_s1 = sld [smem:[#allocation10_spill]] (!%p259_p10)  ;;  %s1207_s12 = scalar_lea.vmem (!%p259_p10), %s1367_s3, %s762_s16  ;;  %800 = vmatprep.mubr.msk.f32.mxu0 (!%p259_p10), %vm1084_vm0, %v1085_v4  ;;  %811 = vmatprep.mubr.msk.f32.mxu1 (!%p259_p10), %vm1084_vm0, %v1085_v4 }
  0x1a   : > { %s1378_s2 = sld [smem:[#allocation11_spill]] (!%p259_p10)  ;;  %s1379_s0 = sld [smem:[#allocation9_spill]] (!%p259_p10)  ;;  %v467_v13 = vld [vmem:[%s1207_s12] sm:$0xff] (!%p259_p10)  ;;  %v468_v14 = vld [vmem:[%s1207_s12 + $0x8] sm:$0xff] (!%p259_p10)  ;;  %v469_v18 = vld [vmem:[%s1207_s12 + $0x10] sm:$0xff] (!%p259_p10) }
  0x1b   : > { %v838_v17 = vpack.c.bf16 (!%p259_p10), %v468_v14, %v467_v13  ;;  %v470_v19 = vld [vmem:[%s1207_s12 + $0x18] sm:$0xff] (!%p259_p10)  ;;  %s769_s14 = sshll.u32 (!%p259_p10), %s1069_s25, 2 }
  0x1c   : > { %v841_v20 = vpack.c.bf16 (!%p259_p10), %v470_v19, %v469_v18 }
  0x1e   : > { %s301_s18 = scalar_select %p300_p12, %s1069_s25, 1 }
  0x1f   : > { %s309_s19 = scalar_lea.vmem %s1377_s1, %s762_s16  ;;  %s1086_s25 = smov [#allocation2]  }
  0x20   : > { %v310_v1 = vld [vmem:[%s309_s19] sm:$0xff]  ;;  %v311_v2 = vld [vmem:[%s309_s19 + $0x8] sm:$0xff]  ;;  %v312_v3 = vld [vmem:[%s309_s19 + $0x10] sm:$0xff]  ;;  %s390_s17 = scalar_lea.vmem %s1378_s2, %s762_s16  ;;  %s761_s20 = sshll.u32 %s301_s18, 3 }
  0x21   : > { %v826_v5 = vpack.c.bf16 %v311_v2, %v310_v1  ;;  %v313_v6 = vld [vmem:[%s309_s19 + $0x18] sm:$0xff]  ;;  %v391_v7 = vld [vmem:[%s390_s17] sm:$0xff]  ;;  %v392_v8 = vld [vmem:[%s390_s17 + $0x8] sm:$0xff]  ;;  %s306_s13 = scalar_lea.vmem %s1379_s0, %s761_s20  ;;  %s283_s19 = sand.u32 1, %s1057_s22  }
  0x22   : > { %v832_v9 = vpack.c.bf16 %v392_v8, %v391_v7  ;;  %v393_v10 = vld [vmem:[%s390_s17 + $0x10] sm:$0xff]  ;;  %v829_v11 = vpack.c.bf16 %v313_v6, %v312_v3  ;;  %v394_v12 = vld [vmem:[%s390_s17 + $0x18] sm:$0xff]  ;;  %v307_v16 = vld [vmem:[%s306_s13] sm:$0xff]  ;;  %s1227_s17 = sshll.u32 %s283_s19, 3  ;;  %s565_s18 = sadd.s32 %s1065_s24, %s769_s14 }
  0x23   : > { %827 = vmatpush3.bf16.msra.mxu0 %v826_v5  ;;  %v835_v15 = vpack.c.bf16 %v394_v12, %v393_v10  ;;  %s1232_s20 = sand.u32 1, %s753_s29   ;;  %s1234_s12 = sshll.u32 %s565_s18, 7 }
  0x24   : > { %828 = vmatprep.subr.bf16.mxu0 %v1083_v0  ;;  %833 = vmatpush3.bf16.msra.mxu1 %v832_v9  ;;  %s285_s16 = scalar_lea.vmem [#allocation2], %s1227_s17  ;;  %s292_s13 = scalar_lea.vmem [#allocation4], %s1227_s17 }
  0x25   : > { %834 = vmatprep.subr.bf16.mxu1 %v1083_v0  ;;  %s569_s9 = sshll.u32 %s285_s16, 4  ;;  %s585_s30 = sshll.u32 %s292_s13, 4  ;;  %s1244_s9 = int_to_ptr.vmem [resolvable:$true] %s569_s9  ;;  %s1252_s30 = int_to_ptr.vmem [resolvable:$true] %s585_s30 }
  0x26   : > { %s1242_s1 = scalar_lea.hbm %s1368_s4, %s1234_s12  ;;  %s1250_s14 = scalar_lea.hbm %s1369_s5, %s1234_s12 }
  0x27   : > { %830 = vmatpush3.bf16.msra.mxu0 %v829_v11  ;;  %s543_s0 = scalar_lea.sflag [#allocation3], %s283_s19  ;;  %s927_s18 = scalar_lea.vmem %s1244_s9, 128 }
  0x28   : > { %837 = vmatprep.subr.bf16.mxu0 %v1083_v0  ;;  %836 = vmatpush3.bf16.msra.mxu1 %v835_v15  ;;  %p928_p13 = scmp.ne.s32.totalorder %s1244_s9, %s927_s18  ;;  %s931_s24 = sshll.u32 %s1086_s25, 4  ;;  %s932_s24 = int_to_ptr.vmem [resolvable:$false] %s931_s24 }
  0x29   : > { %s933_s29 = scalar_lea.vmem %s932_s24, 256  ;;  %p934_p2 = scmp.lt.s32.totalorder %s1244_s9, %s932_s24 }
  0x2a   : > { %801 = vmatmul.mubr.msk.f32.vlgmr.msra.gmra.mrb[0].mxu0 %vm314_vm1, %v307_v16  ;;  %p929_p0 = pnand %p928_p13, %p1177_p3  ;;  %p935_p4 = scmp.lt.s32.totalorder %s933_s29, %s927_s18 }
  0x2b   : > { %839 = vmatpush3.bf16.msra.mxu0 %v838_v17  ;;  %812 = vmatmul.mubr.msk.f32.vlgmr.msra.gmra.mrb[0].mxu1 %vm314_vm1, %v307_v16 }
  0x2c   : > { %840 = vmatprep.subr.bf16.mxu0 %v1083_v0  ;;  %822 = vmatprep.mubr.msk.f32.mxu0 %vm1084_vm0, %v1085_v4  ;;  %p930_p1 = pneg %p929_p0  ;;  %p936_p5 = por %p935_p4, %p934_p2 }
  0x2e   : > { %p937_p6 = pnand %p936_p5, %p930_p1 }
  0x2f   : > { %842 = vmatpush3.bf16.msra.mxu0 %v841_v20 }
  0x32   : > { %823 = vmatmul.mubr.msk.f32.vlgmr.msra.gmra.mrb[2].mxu0 %vm314_vm1, %v307_v16 }
  0xfd   : > { %v384_v21 = vpop.f32.mrb[0].mxu0 }
  0xfe   : > { %389 = vst.msk [vmem:[%s285_s16] sm:$0xff] %vm388_vm2, %v384_v21  ;;  %v802_v22 = vpop.f32.mrb[1].mxu0  ;;  %v461_v23 = vpop.f32.mrb[0].mxu1 }
  0xff   : > { %465 = vst.msk [vmem:[%s292_s13] sm:$0xff] %vm388_vm2, %v461_v23  ;;  %v813_v24 = vpop.f32.mrb[1].mxu1 }
 0x100   : > { %940 = shalt.err (!%p937_p6)
}
 0x101   : > { %s941_s19 = scalar_lea.hbm %s1242_s1, 128  ;;  %s945_s25 = scalar_lea.hbm %s1368_s4, 1024 }
 0x102   : > { %p942_p7 = scmp.ne.s32.totalorder %s1242_s1, %s941_s19  ;;  %p946_p11 = scmp.lt.u32.totalorder %s1242_s1, %s1368_s4 }
 0x103   : > { %p947_p12 = scmp.lt.u32.totalorder %s945_s25, %s941_s19  ;;  %p949_p0 = scmp.lt.u32.totalorder %s941_s19, %s1242_s1 }
 0x104   : > { %p943_p9 = pnand %p942_p7, %p1177_p3 }
 0x105   : > { %p948_p13 = por %p947_p12, %p946_p11 }
 0x106   : > { %p944_p10 = pneg %p943_p9 }
 0x107   : > { %p950_p1 = por %p949_p0, %p948_p13 }
 0x109   : > { %p951_p2 = pnand %p950_p1, %p944_p10 }
 0x10b   : > { %954 = shalt.err (!%p951_p2)
}
 0x10c   : > { %843 = dma.vmem_to_hbm [thread:$0]  (%p1177_p3), %s1244_s9, 128, %s1242_s1, %s543_s0  }
 0x10d   : > { %s548_s18 = scalar_lea.sflag [#allocation5], %s1232_s20  ;;  %s955_s29 = scalar_lea.vmem %s1252_s30, 128 }
 0x10e   : > { %p956_p4 = scmp.ne.s32.totalorder %s1252_s30, %s955_s29  ;;  %s1087_s2 = smov [#allocation4]  }
 0x10f   : > { %s959_s19 = sshll.u32 %s1087_s2, 4  ;;  %s960_s19 = int_to_ptr.vmem [resolvable:$false] %s959_s19 }
 0x110   : > { %p957_p5 = pnand %p956_p4, %p1177_p3  ;;  %s961_s16 = scalar_lea.vmem %s960_s19, 256 }
 0x111   : > { %p962_p7 = scmp.lt.s32.totalorder %s1252_s30, %s960_s19  ;;  %p963_p9 = scmp.lt.s32.totalorder %s961_s16, %s955_s29 }
 0x112   : > { %p958_p6 = pneg %p957_p5 }
 0x113   : > { %p964_p10 = por %p963_p9, %p962_p7 }
 0x115   : > { %p965_p11 = pnand %p964_p10, %p958_p6 }
 0x117   : > { %968 = shalt.err (!%p965_p11)
}
 0x118   : > { %s969_s1 = scalar_lea.hbm %s1250_s14, 128  ;;  %s973_s13 = scalar_lea.hbm %s1369_s5, 1024 }
 0x119   : > { %p970_p12 = scmp.ne.s32.totalorder %s1250_s14, %s969_s1  ;;  %p974_p1 = scmp.lt.u32.totalorder %s1250_s14, %s1369_s5 }
 0x11a   : > { %p975_p2 = scmp.lt.u32.totalorder %s973_s13, %s969_s1  ;;  %p977_p5 = scmp.lt.u32.totalorder %s969_s1, %s1250_s14 }
 0x11b   : > { %p971_p13 = pnand %p970_p12, %p1177_p3 }
 0x11c   : > { %p976_p4 = por %p975_p2, %p974_p1 }
 0x11d   : > { %p972_p0 = pneg %p971_p13 }
 0x11e   : > { %p978_p6 = por %p977_p5, %p976_p4 }
 0x120   : > { %p979_p7 = pnand %p978_p6, %p972_p0 }
 0x122   : > { %982 = shalt.err (!%p979_p7)
}
 0x123   : > { %844 = dma.vmem_to_hbm [thread:$0]  (%p1177_p3), %s1252_s30, 128, %s1250_s14, %s548_s18   ;;  %v537_v25 = vpop.f32.mrb[2].mxu0 }
 0x124   : > { %s299_s29 = scalar_lea.vmem [#allocation6], %s1227_s17  ;;  %s1308_s1 = scalar_lea.hbm %s1370_s6, %s1234_s12  ;;  %v824_v26 = vpop.f32.mrb[3].mxu0 }
 0x125   : > { %s601_s2 = sshll.u32 %s299_s29, 4  ;;  %541 = vst.msk [vmem:[%s299_s29] sm:$0xff] %vm388_vm2, %v537_v25  ;;  %s1088_s30 = smov [#allocation6]   ;;  %s1302_s2 = int_to_ptr.vmem [resolvable:$true] %s601_s2 }
 0x126   : > { %s983_s9 = scalar_lea.vmem %s1302_s2, 128  ;;  %s987_s17 = sshll.u32 %s1088_s30, 4  ;;  %s988_s17 = int_to_ptr.vmem [resolvable:$false] %s987_s17 }
 0x127   : > { %p984_p9 = scmp.ne.s32.totalorder %s1302_s2, %s983_s9  ;;  %s989_s14 = scalar_lea.vmem %s988_s17, 256 }
 0x128   : > { %p990_p12 = scmp.lt.s32.totalorder %s1302_s2, %s988_s17  ;;  %p991_p13 = scmp.lt.s32.totalorder %s989_s14, %s983_s9 }
 0x129   : > { %p985_p10 = pnand %p984_p9, %p1177_p3 }
 0x12a   : > { %p992_p0 = por %p991_p13, %p990_p12 }
 0x12b   : > { %p986_p11 = pneg %p985_p10 }
 0x12d   : > { %p993_p1 = pnand %p992_p0, %p986_p11 }
 0x12f   : > { %996 = shalt.err (!%p993_p1)
}
 0x130   : > { %s997_s12 = scalar_lea.hbm %s1308_s1, 128  ;;  %s1001_s25 = scalar_lea.hbm %s1370_s6, 1024 }
 0x131   : > { %p998_p2 = scmp.ne.s32.totalorder %s1308_s1, %s997_s12  ;;  %p1002_p6 = scmp.lt.u32.totalorder %s1308_s1, %s1370_s6 }
 0x132   : > { %p1003_p7 = scmp.lt.u32.totalorder %s1001_s25, %s997_s12  ;;  %p1005_p10 = scmp.lt.u32.totalorder %s997_s12, %s1308_s1 }
 0x133   : > { %p999_p4 = pnand %p998_p2, %p1177_p3 }
 0x134   : > { %p1004_p9 = por %p1003_p7, %p1002_p6 }
 0x135   : > { %p1000_p5 = pneg %p999_p4 }
 0x136   : > { %p1006_p11 = por %p1005_p10, %p1004_p9 }
 0x138   : > { %p1007_p12 = pnand %p1006_p11, %p1000_p5 }
 0x13a   : > { %1010 = shalt.err (!%p1007_p12)
}
 0x13b   : > { %845 = dma.vmem_to_hbm [thread:$0]  (%p1177_p3), %s1302_s2, 128, %s1308_s1, %s548_s18  }
 0x13c PF: > { %p859_p13 = scmp.ge.s32.totalorder %s1081_s28, 2  ;;  %s613_s19 = sand.u32 1, %s1053_s21  }
 0x13d   : > { %s614_s16 = scalar_lea.sflag [#allocation3], %s613_s19 }
 0x13e   : > { %p850_p0 = pnand %p859_p13, %p1188_p8 }
 0x140   : > { %1044 = dma.done.wait (!%p850_p0), %s614_s16, 128  }
 0x141   : > { %1046 = vsyncadd (!%p850_p0), %s614_s16, 4294967168  ;;  %s1380_s9 = sadd.s32 4294967294, %s1081_s28  }
 0x142   : > { %s622_s30 = sand.u32 1, %s1380_s9  }
 0x143   : > { %s623_s10 = scalar_lea.sflag [#allocation5], %s622_s30 }
 0x144   : > { %1048 = dma.done.wait (!%p850_p0), %s623_s10, 256  }
 0x145   : > { %1050 = vsyncadd (!%p850_p0), %s623_s10, 4294967040  ;;  %s23_s28 = sadd.s32 1, %s1081_s28   ;;  %s1381_s21 = smov %s1057_s22 }
 0x146   : > { %p20_p3 = scmp.ge.s32.totalorder %s23_s28, 10   ;;  %s1382_s22 = smov %s1061_s23 }
 0x147   : > { %s1383_s23 = smov %s1197_s15  ;;  %s1384_s24 = smov %s1073_s26 }
 0x148   : > { %s1385_s25 = smov %s1077_s27  ;;  %s1386_s26 = smov %s1389_s7 }
 0x149   : > { %s1387_s27 = smov %s1393_s8  ;;  %22 = sbr.rel (!%p20_p3) target bundleno = 11 (0xb), region = 106 }
 0x150   :  { %637 = vsyncpa [#allocation3], 1 }
 0x151   :  { %639 = vsyncpa [#allocation3 + $0x1], 1 }
 0x152   :  { %640 = vsyncpa [#allocation5], 1 }
 0x153   :  { %642 = vsyncpa [#allocation5 + $0x1], 1 }

</bundles_post_ra>
